<compile_context>
chip_gen: v6e
topology: v6e:2x2x1
jax: 0.10.0
libtpu: 0.0.40
codegen_flags: <defaults>
</compile_context>

<pallas_src>
import functools

import jax
import jax.numpy as jnp
from jax import lax
from jax.experimental import pallas as pl
from jax.experimental.pallas import tpu as pltpu

EPS = 1e-5
CSUB = 128  # in-kernel channel sub-chunk (one lane-group)


def _dwconv_bn_kernel(x_ref, w_ref, gamma_ref, beta_ref, o_ref, xpad_ref):
    # x_ref:     (N, H, W, Cb)        unpadded input tile (one channel block)
    # w_ref:     (9, Cb)              depthwise 3x3 taps, row-major (ky*3 + kx)
    # gamma_ref: (1, Cb)              BN scale
    # beta_ref:  (1, Cb)              BN shift
    # o_ref:     (N, H, W, Cb)        output tile
    # xpad_ref:  (N, H+2, W+2, CSUB)  VMEM scratch for ONE channel sub-chunk
    n, h, w, cb = x_ref.shape
    csub = xpad_ref.shape[-1]
    n_chunks = cb // csub

    # Zero only the four halo strips (top/bottom rows, left/right columns).  The interior
    # is fully overwritten for every chunk, and the halos never receive non-zero writes,
    # so zeroing once per grid step is sufficient (scratch is per-core / persistent, and
    # we re-zero every step so megacore partitioning can never expose garbage).
    xpad_ref[:, 0:1, :, :] = jnp.zeros((n, 1, w + 2, csub), jnp.float32)
    xpad_ref[:, h + 1:h + 2, :, :] = jnp.zeros((n, 1, w + 2, csub), jnp.float32)
    xpad_ref[:, 1:1 + h, 0:1, :] = jnp.zeros((n, h, 1, csub), jnp.float32)
    xpad_ref[:, 1:1 + h, w + 1:w + 2, :] = jnp.zeros((n, h, 1, csub), jnp.float32)

    # Hoist + pre-cast the small per-channel operands once per grid step.
    w_all = w_ref[...].astype(jnp.float32)          # (9, Cb)
    gamma_all = gamma_ref[...].astype(jnp.float32)  # (1, Cb)
    beta_all = beta_ref[...].astype(jnp.float32)    # (1, Cb)
    cnt = jnp.float32(n * h * w)
    inv_cnt = jnp.float32(1.0) / cnt

    # Independent 128-channel sub-chunks: pad, conv, reduce, normalize, store each chunk
    # before moving on, so the live set per iteration stays tiny (no spills).  Fully
    # unrolled static loop (<= 7 iterations); nothing carries between iterations.
    for ci in range(n_chunks):
        c0 = ci * csub

        xc = x_ref[:, :, :, c0:c0 + csub].astype(jnp.float32)   # (N, H, W, csub)
        xpad_ref[:, 1:1 + h, 1:1 + w, :] = xc

        # Depthwise 3x3 conv = 9 shifted elementwise multiply-adds (pure VPU work).
        acc = None
        for ky in range(3):
            for kx in range(3):
                tap = w_all[ky * 3 + kx, c0:c0 + csub]           # (csub,)
                win = xpad_ref[:, ky:ky + h, kx:kx + w, :]       # (N, H, W, csub)
                term = win * tap
                acc = term if acc is None else acc + term

        # BatchNorm2d (training-mode batch stats) in a single elementwise pass:
        # per-channel sum and sum-of-squares over (N, H, W).
        s = jnp.sum(acc, axis=(0, 1, 2), keepdims=True)          # (1,1,1,csub)
        sq = jnp.sum(acc * acc, axis=(0, 1, 2), keepdims=True)   # (1,1,1,csub)
        mean = s * inv_cnt
        var = jnp.maximum(sq * inv_cnt - mean * mean, 0.0)
        g = gamma_all[0, c0:c0 + csub]
        b = beta_all[0, c0:c0 + csub]
        scale = lax.rsqrt(var + EPS) * g                         # (1,1,1,csub)
        shift = b - mean * scale                                 # (1,1,1,csub)
        o_ref[:, :, :, c0:c0 + csub] = (acc * scale + shift).astype(o_ref.dtype)


def _pick_c_blk(c, target):
    """Largest multiple-of-128 channel block that divides C, is <= target, and (when
    possible) leaves a grid of length >= 2 so both v7x TensorCores get work."""
    k = c // 128
    divs = [d for d in range(1, k + 1) if k % d == 0]
    cand = [d * 128 for d in divs if d * 128 <= target]
    if not cand:
        cand = [128]
    pref = [b for b in cand if c // b >= 2]
    pool = pref if pref else cand
    return max(pool)


@functools.partial(jax.jit, static_argnames=("max_c_blk",))
def dwconv_bn_nchw(x_nchw, w_dw, gamma, beta, *, max_c_blk=384):
    """x_nchw: (N, C, H, W); w_dw: (C, 1, 3, 3); gamma/beta: (C,). Returns (N, C, H, W)."""
    n, c, h, wdim = x_nchw.shape
    assert c % 128 == 0, "channel count must be a multiple of 128 (lane width)"
    c_blk = _pick_c_blk(c, max_c_blk)

    # Interface glue: NCHW -> NHWC (channels onto the lane dim); required while the
    # module contract is NCHW (see TODO at top of file).
    x_nhwc = jnp.transpose(x_nchw, (0, 2, 3, 1))
    w_taps = jnp.transpose(w_dw.reshape(c, 9), (1, 0))        # (9, C), row-major taps
    gamma2 = gamma.reshape(1, c)
    beta2 = beta.reshape(1, c)

    out_nhwc = pl.pallas_call(
        _dwconv_bn_kernel,
        out_shape=jax.ShapeDtypeStruct((n, h, wdim, c), x_nchw.dtype),
        grid_spec=pltpu.PrefetchScalarGridSpec(
            num_scalar_prefetch=0,
            grid=(c // c_blk,),
            in_specs=[
                pl.BlockSpec((n, h, wdim, c_blk), lambda ci: (0, 0, 0, ci)),
                pl.BlockSpec((9, c_blk), lambda ci: (0, ci)),
                pl.BlockSpec((1, c_blk), lambda ci: (0, ci)),
                pl.BlockSpec((1, c_blk), lambda ci: (0, ci)),
            ],
            out_specs=pl.BlockSpec((n, h, wdim, c_blk), lambda ci: (0, 0, 0, ci)),
            scratch_shapes=[pltpu.VMEM((n, h + 2, wdim + 2, CSUB), jnp.float32)],
        ),
        compiler_params=pltpu.CompilerParams(
            dimension_semantics=("parallel",)),
    )(x_nhwc, w_taps, gamma2, beta2)

    # Interface glue: NHWC -> NCHW.
    return jnp.transpose(out_nhwc, (0, 3, 1, 2))


def _reference(x_nchw, w_dw, gamma, beta):
    """Pure-JAX reference: depthwise conv + training-mode batchnorm, NCHW."""
    c = x_nchw.shape[1]
    y = lax.conv_general_dilated(
        x_nchw, w_dw, window_strides=(1, 1), padding=((1, 1), (1, 1)),
        dimension_numbers=("NCHW", "OIHW", "NCHW"), feature_group_count=c)
    mean = jnp.mean(y, axis=(0, 2, 3), keepdims=True)
    var = jnp.mean((y - mean) ** 2, axis=(0, 2, 3), keepdims=True)
    yhat = (y - mean) * lax.rsqrt(var + EPS)
    return yhat * gamma[None, :, None, None] + beta[None, :, None, None]


if __name__ == "__main__":
    # Small shapes consistent with the module: the original is (1, 2688, 7, 7) with a
    # depthwise 3x3 conv; we use a scaled-down channel count (multiple of 128 lanes) so
    # the channel grid still has >= 2 blocks and the inner chunk loop is exercised.
    N, C, H, W = 2, 256, 7, 7

    key = jax.random.PRNGKey(0)
    k_x, k_w, k_g, k_b = jax.random.split(key, 4)
    x = jax.random.normal(k_x, (N, C, H, W), jnp.float32)
    w_dw = jax.random.normal(k_w, (C, 1, 3, 3), jnp.float32) * 0.1   # depthwise weights
    gamma = 1.0 + 0.1 * jax.random.normal(k_g, (C,), jnp.float32)     # BN weight
    beta = 0.1 * jax.random.normal(k_b, (C,), jnp.float32)            # BN bias

    out = dwconv_bn_nchw(x, w_dw, gamma, beta)
    out = jax.block_until_ready(out)

    ref = _reference(x, w_dw, gamma, beta)
    assert out.shape == (N, C, H, W)
    err = float(jnp.max(jnp.abs(out - ref)))
    assert jnp.allclose(out, ref, atol=1e-4, rtol=1e-4), err

    print("KERNEL_OK")
</pallas_src>

<mosaic_0001>
module attributes {stable_mosaic.version = 11 : i64} {
  func.func @_dwconv_bn_kernel(%arg0: i32, %arg1: memref<2x7x7x128xf32, #tpu.memory_space<vmem>>, %arg2: memref<9x128xf32, #tpu.memory_space<vmem>>, %arg3: memref<1x128xf32, #tpu.memory_space<vmem>>, %arg4: memref<1x128xf32, #tpu.memory_space<vmem>>, %arg5: memref<2x7x7x128xf32, #tpu.memory_space<vmem>>, %arg6: memref<2x9x9x128xf32, #tpu.memory_space<vmem>>) attributes {dimension_semantics = [#tpu.dimension_semantics<parallel>], iteration_bounds = array<i64: 2>, scalar_prefetch = 0 : i64, scratch_operands = 1 : i64, tpu.core_type = #tpu.core_type<tc>, window_params = [{transform_indices = @transform_0, window_bounds = array<i64: 2, 7, 7, 128>}, {transform_indices = @transform_1, window_bounds = array<i64: 9, 128>}, {transform_indices = @transform_2, window_bounds = array<i64: 1, 128>}, {transform_indices = @transform_3, window_bounds = array<i64: 1, 128>}, {transform_indices = @transform_4, window_bounds = array<i64: 2, 7, 7, 128>}]} {
    %cst = arith.constant 0.000000e+00 : f32
    %0 = vector.broadcast %cst : f32 to vector<2x1x9x128xf32>
    %c0 = arith.constant 0 : index
    %c0_0 = arith.constant 0 : index
    %c0_1 = arith.constant 0 : index
    %c0_2 = arith.constant 0 : index
    %1 = vector.load %arg6[%c0, %c0_0, %c0_1, %c0_2] : memref<2x9x9x128xf32, #tpu.memory_space<vmem>>, vector<2x1x9x128xf32>
    tpu.vector_store %arg6[%c0, %c0_0, %c0_1, %c0_2], %0 {strides = array<i32>} : memref<2x9x9x128xf32, #tpu.memory_space<vmem>>, vector<2x1x9x128xf32>,
    %cst_3 = arith.constant 0.000000e+00 : f32
    %2 = vector.broadcast %cst_3 : f32 to vector<2x1x9x128xf32>
    %c0_4 = arith.constant 0 : index
    %c8 = arith.constant 8 : index
    %c0_5 = arith.constant 0 : index
    %c0_6 = arith.constant 0 : index
    %3 = vector.load %arg6[%c0_4, %c8, %c0_5, %c0_6] : memref<2x9x9x128xf32, #tpu.memory_space<vmem>>, vector<2x1x9x128xf32>
    tpu.vector_store %arg6[%c0_4, %c8, %c0_5, %c0_6], %2 {strides = array<i32>} : memref<2x9x9x128xf32, #tpu.memory_space<vmem>>, vector<2x1x9x128xf32>,
    %cst_7 = arith.constant 0.000000e+00 : f32
    %4 = vector.broadcast %cst_7 : f32 to vector<2x7x1x128xf32>
    %c0_8 = arith.constant 0 : index
    %c1 = arith.constant 1 : index
    %c0_9 = arith.constant 0 : index
    %c0_10 = arith.constant 0 : index
    %5 = vector.load %arg6[%c0_8, %c1, %c0_9, %c0_10] : memref<2x9x9x128xf32, #tpu.memory_space<vmem>>, vector<2x7x1x128xf32>
    tpu.vector_store %arg6[%c0_8, %c1, %c0_9, %c0_10], %4 {strides = array<i32>} : memref<2x9x9x128xf32, #tpu.memory_space<vmem>>, vector<2x7x1x128xf32>,
    %cst_11 = arith.constant 0.000000e+00 : f32
    %6 = vector.broadcast %cst_11 : f32 to vector<2x7x1x128xf32>
    %c0_12 = arith.constant 0 : index
    %c1_13 = arith.constant 1 : index
    %c8_14 = arith.constant 8 : index
    %c0_15 = arith.constant 0 : index
    %7 = vector.load %arg6[%c0_12, %c1_13, %c8_14, %c0_15] : memref<2x9x9x128xf32, #tpu.memory_space<vmem>>, vector<2x7x1x128xf32>
    tpu.vector_store %arg6[%c0_12, %c1_13, %c8_14, %c0_15], %6 {strides = array<i32>} : memref<2x9x9x128xf32, #tpu.memory_space<vmem>>, vector<2x7x1x128xf32>,
    %c0_16 = arith.constant 0 : index
    %c0_17 = arith.constant 0 : index
    %8 = vector.load %arg2[%c0_16, %c0_17] : memref<9x128xf32, #tpu.memory_space<vmem>>, vector<9x128xf32>
    %c0_18 = arith.constant 0 : index
    %c0_19 = arith.constant 0 : index
    %9 = vector.load %arg3[%c0_18, %c0_19] : memref<1x128xf32, #tpu.memory_space<vmem>>, vector<1x128xf32>
    %c0_20 = arith.constant 0 : index
    %c0_21 = arith.constant 0 : index
    %10 = vector.load %arg4[%c0_20, %c0_21] : memref<1x128xf32, #tpu.memory_space<vmem>>, vector<1x128xf32>
    %cst_22 = arith.constant 1.000000e+00 : f32
    %cst_23 = arith.constant 9.800000e+01 : f32
    %11 = arith.divf %cst_22, %cst_23 : f32
    %c0_24 = arith.constant 0 : index
    %c0_25 = arith.constant 0 : index
    %c0_26 = arith.constant 0 : index
    %c0_27 = arith.constant 0 : index
    %12 = vector.load %arg1[%c0_24, %c0_25, %c0_26, %c0_27] : memref<2x7x7x128xf32, #tpu.memory_space<vmem>>, vector<2x7x7x128xf32>
    %c0_28 = arith.constant 0 : index
    %c1_29 = arith.constant 1 : index
    %c1_30 = arith.constant 1 : index
    %c0_31 = arith.constant 0 : index
    %13 = vector.load %arg6[%c0_28, %c1_29, %c1_30, %c0_31] : memref<2x9x9x128xf32, #tpu.memory_space<vmem>>, vector<2x7x7x128xf32>
    tpu.vector_store %arg6[%c0_28, %c1_29, %c1_30, %c0_31], %12 {strides = array<i32>} : memref<2x9x9x128xf32, #tpu.memory_space<vmem>>, vector<2x7x7x128xf32>,
    %14 = vector.extract_strided_slice %8 {offsets = [0, 0], sizes = [1, 128], strides = [1, 1]} : vector<9x128xf32> to vector<1x128xf32>
    %15 = vector.shape_cast %14 : vector<1x128xf32> to vector<128xf32>
    %c0_32 = arith.constant 0 : index
    %c0_33 = arith.constant 0 : index
    %c0_34 = arith.constant 0 : index
    %c0_35 = arith.constant 0 : index
    %16 = vector.load %arg6[%c0_32, %c0_33, %c0_34, %c0_35] : memref<2x9x9x128xf32, #tpu.memory_space<vmem>>, vector<2x7x7x128xf32>
    %17 = vector.shape_cast %15 : vector<128xf32> to vector<1x1x1x128xf32>
    %18 = vector.broadcast %17 : vector<1x1x1x128xf32> to vector<2x7x7x128xf32>
    %19 = arith.mulf %16, %18 : vector<2x7x7x128xf32>
    %20 = vector.extract_strided_slice %8 {offsets = [1, 0], sizes = [1, 128], strides = [1, 1]} : vector<9x128xf32> to vector<1x128xf32>
    %21 = vector.shape_cast %20 : vector<1x128xf32> to vector<128xf32>
    %c0_36 = arith.constant 0 : index
    %c0_37 = arith.constant 0 : index
    %c1_38 = arith.constant 1 : index
    %c0_39 = arith.constant 0 : index
    %22 = vector.load %arg6[%c0_36, %c0_37, %c1_38, %c0_39] : memref<2x9x9x128xf32, #tpu.memory_space<vmem>>, vector<2x7x7x128xf32>
    %23 = vector.shape_cast %21 : vector<128xf32> to vector<1x1x1x128xf32>
    %24 = vector.broadcast %23 : vector<1x1x1x128xf32> to vector<2x7x7x128xf32>
    %25 = arith.mulf %22, %24 : vector<2x7x7x128xf32>
    %26 = arith.addf %19, %25 : vector<2x7x7x128xf32>
    %27 = vector.extract_strided_slice %8 {offsets = [2, 0], sizes = [1, 128], strides = [1, 1]} : vector<9x128xf32> to vector<1x128xf32>
    %28 = vector.shape_cast %27 : vector<1x128xf32> to vector<128xf32>
    %c0_40 = arith.constant 0 : index
    %c0_41 = arith.constant 0 : index
    %c2 = arith.constant 2 : index
    %c0_42 = arith.constant 0 : index
    %29 = vector.load %arg6[%c0_40, %c0_41, %c2, %c0_42] : memref<2x9x9x128xf32, #tpu.memory_space<vmem>>, vector<2x7x7x128xf32>
    %30 = vector.shape_cast %28 : vector<128xf32> to vector<1x1x1x128xf32>
    %31 = vector.broadcast %30 : vector<1x1x1x128xf32> to vector<2x7x7x128xf32>
    %32 = arith.mulf %29, %31 : vector<2x7x7x128xf32>
    %33 = arith.addf %26, %32 : vector<2x7x7x128xf32>
    %34 = vector.extract_strided_slice %8 {offsets = [3, 0], sizes = [1, 128], strides = [1, 1]} : vector<9x128xf32> to vector<1x128xf32>
    %35 = vector.shape_cast %34 : vector<1x128xf32> to vector<128xf32>
    %c0_43 = arith.constant 0 : index
    %c1_44 = arith.constant 1 : index
    %c0_45 = arith.constant 0 : index
    %c0_46 = arith.constant 0 : index
    %36 = vector.load %arg6[%c0_43, %c1_44, %c0_45, %c0_46] : memref<2x9x9x128xf32, #tpu.memory_space<vmem>>, vector<2x7x7x128xf32>
    %37 = vector.shape_cast %35 : vector<128xf32> to vector<1x1x1x128xf32>
    %38 = vector.broadcast %37 : vector<1x1x1x128xf32> to vector<2x7x7x128xf32>
    %39 = arith.mulf %36, %38 : vector<2x7x7x128xf32>
    %40 = arith.addf %33, %39 : vector<2x7x7x128xf32>
    %41 = vector.extract_strided_slice %8 {offsets = [4, 0], sizes = [1, 128], strides = [1, 1]} : vector<9x128xf32> to vector<1x128xf32>
    %42 = vector.shape_cast %41 : vector<1x128xf32> to vector<128xf32>
    %c0_47 = arith.constant 0 : index
    %c1_48 = arith.constant 1 : index
    %c1_49 = arith.constant 1 : index
    %c0_50 = arith.constant 0 : index
    %43 = vector.load %arg6[%c0_47, %c1_48, %c1_49, %c0_50] : memref<2x9x9x128xf32, #tpu.memory_space<vmem>>, vector<2x7x7x128xf32>
    %44 = vector.shape_cast %42 : vector<128xf32> to vector<1x1x1x128xf32>
    %45 = vector.broadcast %44 : vector<1x1x1x128xf32> to vector<2x7x7x128xf32>
    %46 = arith.mulf %43, %45 : vector<2x7x7x128xf32>
    %47 = arith.addf %40, %46 : vector<2x7x7x128xf32>
    %48 = vector.extract_strided_slice %8 {offsets = [5, 0], sizes = [1, 128], strides = [1, 1]} : vector<9x128xf32> to vector<1x128xf32>
    %49 = vector.shape_cast %48 : vector<1x128xf32> to vector<128xf32>
    %c0_51 = arith.constant 0 : index
    %c1_52 = arith.constant 1 : index
    %c2_53 = arith.constant 2 : index
    %c0_54 = arith.constant 0 : index
    %50 = vector.load %arg6[%c0_51, %c1_52, %c2_53, %c0_54] : memref<2x9x9x128xf32, #tpu.memory_space<vmem>>, vector<2x7x7x128xf32>
    %51 = vector.shape_cast %49 : vector<128xf32> to vector<1x1x1x128xf32>
    %52 = vector.broadcast %51 : vector<1x1x1x128xf32> to vector<2x7x7x128xf32>
    %53 = arith.mulf %50, %52 : vector<2x7x7x128xf32>
    %54 = arith.addf %47, %53 : vector<2x7x7x128xf32>
    %55 = vector.extract_strided_slice %8 {offsets = [6, 0], sizes = [1, 128], strides = [1, 1]} : vector<9x128xf32> to vector<1x128xf32>
    %56 = vector.shape_cast %55 : vector<1x128xf32> to vector<128xf32>
    %c0_55 = arith.constant 0 : index
    %c2_56 = arith.constant 2 : index
    %c0_57 = arith.constant 0 : index
    %c0_58 = arith.constant 0 : index
    %57 = vector.load %arg6[%c0_55, %c2_56, %c0_57, %c0_58] : memref<2x9x9x128xf32, #tpu.memory_space<vmem>>, vector<2x7x7x128xf32>
    %58 = vector.shape_cast %56 : vector<128xf32> to vector<1x1x1x128xf32>
    %59 = vector.broadcast %58 : vector<1x1x1x128xf32> to vector<2x7x7x128xf32>
    %60 = arith.mulf %57, %59 : vector<2x7x7x128xf32>
    %61 = arith.addf %54, %60 : vector<2x7x7x128xf32>
    %62 = vector.extract_strided_slice %8 {offsets = [7, 0], sizes = [1, 128], strides = [1, 1]} : vector<9x128xf32> to vector<1x128xf32>
    %63 = vector.shape_cast %62 : vector<1x128xf32> to vector<128xf32>
    %c0_59 = arith.constant 0 : index
    %c2_60 = arith.constant 2 : index
    %c1_61 = arith.constant 1 : index
    %c0_62 = arith.constant 0 : index
    %64 = vector.load %arg6[%c0_59, %c2_60, %c1_61, %c0_62] : memref<2x9x9x128xf32, #tpu.memory_space<vmem>>, vector<2x7x7x128xf32>
    %65 = vector.shape_cast %63 : vector<128xf32> to vector<1x1x1x128xf32>
    %66 = vector.broadcast %65 : vector<1x1x1x128xf32> to vector<2x7x7x128xf32>
    %67 = arith.mulf %64, %66 : vector<2x7x7x128xf32>
    %68 = arith.addf %61, %67 : vector<2x7x7x128xf32>
    %69 = vector.extract_strided_slice %8 {offsets = [8, 0], sizes = [1, 128], strides = [1, 1]} : vector<9x128xf32> to vector<1x128xf32>
    %70 = vector.shape_cast %69 : vector<1x128xf32> to vector<128xf32>
    %c0_63 = arith.constant 0 : index
    %c2_64 = arith.constant 2 : index
    %c2_65 = arith.constant 2 : index
    %c0_66 = arith.constant 0 : index
    %71 = vector.load %arg6[%c0_63, %c2_64, %c2_65, %c0_66] : memref<2x9x9x128xf32, #tpu.memory_space<vmem>>, vector<2x7x7x128xf32>
    %72 = vector.shape_cast %70 : vector<128xf32> to vector<1x1x1x128xf32>
    %73 = vector.broadcast %72 : vector<1x1x1x128xf32> to vector<2x7x7x128xf32>
    %74 = arith.mulf %71, %73 : vector<2x7x7x128xf32>
    %75 = arith.addf %68, %74 : vector<2x7x7x128xf32>
    %cst_67 = arith.constant dense<0.000000e+00> : vector<128xf32>
    %76 = vector.multi_reduction <add>, %75, %cst_67 [0, 1, 2] : vector<2x7x7x128xf32> to vector<128xf32>
    %77 = vector.shape_cast %76 : vector<128xf32> to vector<1x1x1x128xf32>
    %78 = arith.mulf %75, %75 : vector<2x7x7x128xf32>
    %cst_68 = arith.constant dense<0.000000e+00> : vector<128xf32>
    %79 = vector.multi_reduction <add>, %78, %cst_68 [0, 1, 2] : vector<2x7x7x128xf32> to vector<128xf32>
    %80 = vector.shape_cast %79 : vector<128xf32> to vector<1x1x1x128xf32>
    %81 = vector.broadcast %11 : f32 to vector<1x1x1x128xf32>
    %82 = arith.mulf %77, %81 : vector<1x1x1x128xf32>
    %83 = vector.broadcast %11 : f32 to vector<1x1x1x128xf32>
    %84 = arith.mulf %80, %83 : vector<1x1x1x128xf32>
    %85 = arith.mulf %82, %82 : vector<1x1x1x128xf32>
    %86 = arith.subf %84, %85 : vector<1x1x1x128xf32>
    %cst_69 = arith.constant 0.000000e+00 : f32
    %87 = vector.broadcast %cst_69 : f32 to vector<1x1x1x128xf32>
    %88 = arith.maximumf %86, %87 : vector<1x1x1x128xf32>
    %89 = vector.shape_cast %9 : vector<1x128xf32> to vector<128xf32>
    %90 = vector.shape_cast %10 : vector<1x128xf32> to vector<128xf32>
    %cst_70 = arith.constant 9.99999974E-6 : f32
    %91 = vector.broadcast %cst_70 : f32 to vector<1x1x1x128xf32>
    %92 = arith.addf %88, %91 : vector<1x1x1x128xf32>
    %93 = math.rsqrt %92 : vector<1x1x1x128xf32>
    %94 = vector.shape_cast %89 : vector<128xf32> to vector<1x1x1x128xf32>
    %95 = arith.mulf %93, %94 : vector<1x1x1x128xf32>
    %96 = arith.mulf %82, %95 : vector<1x1x1x128xf32>
    %97 = vector.shape_cast %90 : vector<128xf32> to vector<1x1x1x128xf32>
    %98 = arith.subf %97, %96 : vector<1x1x1x128xf32>
    %99 = vector.broadcast %95 : vector<1x1x1x128xf32> to vector<2x7x7x128xf32>
    %100 = arith.mulf %75, %99 : vector<2x7x7x128xf32>
    %101 = vector.broadcast %98 : vector<1x1x1x128xf32> to vector<2x7x7x128xf32>
    %102 = arith.addf %100, %101 : vector<2x7x7x128xf32>
    %c0_71 = arith.constant 0 : index
    %c0_72 = arith.constant 0 : index
    %c0_73 = arith.constant 0 : index
    %c0_74 = arith.constant 0 : index
    %103 = vector.load %arg5[%c0_71, %c0_72, %c0_73, %c0_74] : memref<2x7x7x128xf32, #tpu.memory_space<vmem>>, vector<2x7x7x128xf32>
    tpu.vector_store %arg5[%c0_71, %c0_72, %c0_73, %c0_74], %102 {strides = array<i32>} : memref<2x7x7x128xf32, #tpu.memory_space<vmem>>, vector<2x7x7x128xf32>,
    return
  }
  func.func @transform_0(%arg0: i32) -> (i32, i32, i32, i32) {
    %c0_i32 = arith.constant 0 : i32
    %c0_i32_0 = arith.constant 0 : i32
    %c0_i32_1 = arith.constant 0 : i32
    %c0_i32_2 = arith.constant 0 : i32
    return %c0_i32, %c0_i32_0, %c0_i32_1, %arg0 : i32, i32, i32, i32
  }
  func.func @transform_1(%arg0: i32) -> (i32, i32) {
    %c0_i32 = arith.constant 0 : i32
    %c0_i32_0 = arith.constant 0 : i32
    return %c0_i32, %arg0 : i32, i32
  }
  func.func @transform_2(%arg0: i32) -> (i32, i32) {
    %c0_i32 = arith.constant 0 : i32
    %c0_i32_0 = arith.constant 0 : i32
    return %c0_i32, %arg0 : i32, i32
  }
  func.func @transform_3(%arg0: i32) -> (i32, i32) {
    %c0_i32 = arith.constant 0 : i32
    %c0_i32_0 = arith.constant 0 : i32
    return %c0_i32, %arg0 : i32, i32
  }
  func.func @transform_4(%arg0: i32) -> (i32, i32, i32, i32) {
    %c0_i32 = arith.constant 0 : i32
    %c0_i32_0 = arith.constant 0 : i32
    %c0_i32_1 = arith.constant 0 : i32
    %c0_i32_2 = arith.constant 0 : i32
    return %c0_i32, %c0_i32_0, %c0_i32_1, %arg0 : i32, i32, i32, i32
  }
}

</mosaic_0001>

<bundles_post_ra>
// kernel: dwconv_bn_nchw.1
= control target key start
LH: loop header
LB: loop body
LE: loop exit
PB: predicated region body
PF: predicated region fallthrough
CT: control target
= control target key end

     0   :  { %s1258_s15 = smov 0   ;;  %s1260_s16 = smov 0   ;;  %s1757_s0 = inlined_call_operand.vmem [shape: f32[2,7,7,256], index: 0, kind: input, shape index: {}]   ;;  %s1758_s1 = inlined_call_operand.vmem [shape: f32[9,256], index: 1, kind: input, shape index: {}]   ;;  %s1759_s2 = inlined_call_operand.vmem [shape: f32[1,256], index: 2, kind: input, shape index: {}]   ;;  %s1760_s3 = inlined_call_operand.vmem [shape: f32[1,256], index: 3, kind: input, shape index: {}]   ;;  %s1761_s4 = inlined_call_operand.vmem [shape: f32[2,7,7,256], index: 4, kind: output, shape index: {}]  }
   0x1   :  { %s1262_s17 = smov 0  }
   0x2 LB: > { %s1274_s18 = sadd.s32 4294967295, %s1230_s17   ;;  %s1277_s19 = sadd.s32 1, %s1230_s17   ;;  %s1230_s17 = sphi %s1262_s17, %s1770_s17   ;;  %s1226_s16 = sphi %s1260_s16, %s1769_s16   ;;  %s1222_s15 = sphi %s1258_s15, %s1768_s15  }
   0x3   : > { %s18_s20 = ssub.s32 %s1230_s17, %s1277_s19  ;;  %s21_s21 = sadd.s32 1, %s1226_s16 }
   0x4   : > { %p19_p0 = scmp.eq.s32.totalorder %s18_s20, 0  ;;  %p28_p1 = scmp.ne.s32.totalorder %s1226_s16, %s1222_s15 }
   0x5   : > { %p29_p2 = scmp.eq.s32.totalorder %s1230_s17, 0  ;;  %p136_p3 = scmp.eq.s32.totalorder %s1274_s18, 1 }
   0x6   : > { %s1287_s22 = scalar_select %p19_p0, %s1226_s16, %s21_s21  }
   0x7   : > { %p1289_p4 = por %p29_p2, %p28_p1  ;;  %p1293_p5 = por %p136_p3, %p28_p1 }
   0x8   : > { %p1169_p6 = scmp.ge.s32.totalorder %s1230_s17, 2 }
   0xa   : > { %158 = sbr.rel (%p1169_p6) target bundleno = 31 (0x1f), region = 16 }
   0xf   : > { %161 = sbr.rel (!%p1289_p4) target bundleno = 26 (0x1a), region = 20  ;;  %s163_s25 = sand.u32 (%p1289_p4), 1, %s1226_s16  }
  0x10   : > { %s1170_s26 = sshll.u32 (%p1289_p4), %s1230_s17, 3  ;;  %s1179_s27 = smul.u32 (%p1289_p4), 112, %s163_s25 }
  0x11   : > { %s167_s30 = scalar_lea.vmem (%p1289_p4), %s1757_s0, %s1170_s26 }
  0x12   : > { %v222_v0 = vld [vmem:[%s167_s30] sm:$0xff] (%p1289_p4)  ;;  %v224_v1 = vld [vmem:[%s167_s30 + $0x10] sm:$0xff] (%p1289_p4)  ;;  %s165_s5 = scalar_lea.vmem (%p1289_p4), [#allocation3], %s1179_s27 }
  0x13   : > { %v226_v2 = vld [vmem:[%s167_s30 + $0x20] sm:$0xff] (%p1289_p4)  ;;  %v228_v3 = vld [vmem:[%s167_s30 + $0x30] sm:$0xff] (%p1289_p4)  ;;  %223 = vst [vmem:[%s165_s5] sm:$0xff] (%p1289_p4), %v222_v0  ;;  %225 = vst [vmem:[%s165_s5 + $0x8] sm:$0xff] (%p1289_p4), %v224_v1 }
  0x14   : > { %v230_v4 = vld [vmem:[%s167_s30 + $0x40] sm:$0xff]  ;;  %v232_v5 = vld [vmem:[%s167_s30 + $0x50] sm:$0xff]  ;;  %227 = vst [vmem:[%s165_s5 + $0x10] sm:$0xff] %v226_v2  ;;  %229 = vst [vmem:[%s165_s5 + $0x18] sm:$0xff] %v228_v3 }
  0x15   : > { %231 = vst [vmem:[%s165_s5 + $0x20] sm:$0xff] %v230_v4  ;;  %233 = vst [vmem:[%s165_s5 + $0x28] sm:$0xff] %v232_v5  ;;  %v234_v6 = vld [vmem:[%s167_s30 + $0x60] sm:$0xff]  ;;  %v236_v7 = vld [vmem:[%s167_s30 + $0x70] sm:$0xff] }
  0x16   : > { %v238_v8 = vld [vmem:[%s167_s30 + $0x80] sm:$0xff]  ;;  %235 = vst [vmem:[%s165_s5 + $0x30] sm:$0xff] %v234_v6  ;;  %237 = vst [vmem:[%s165_s5 + $0x38] sm:$0xff] %v236_v7  ;;  %v240_v9 = vld [vmem:[%s167_s30 + $0x90] sm:$0xff] }
  0x17   : > { %239 = vst [vmem:[%s165_s5 + $0x40] sm:$0xff] %v238_v8  ;;  %v242_v10 = vld [vmem:[%s167_s30 + $0xa0] sm:$0xff]  ;;  %v244_v11 = vld [vmem:[%s167_s30 + $0xb0] sm:$0xff]  ;;  %241 = vst [vmem:[%s165_s5 + $0x48] sm:$0xff] %v240_v9 }
  0x18   : > { %243 = vst [vmem:[%s165_s5 + $0x50] sm:$0xff] %v242_v10  ;;  %245 = vst [vmem:[%s165_s5 + $0x58] sm:$0xff] %v244_v11  ;;  %v246_v12 = vld [vmem:[%s167_s30 + $0xc0] sm:$0xff]  ;;  %v248_v13 = vld [vmem:[%s167_s30 + $0xd0] sm:$0xff] }
  0x19   : > { %247 = vst [vmem:[%s165_s5 + $0x60] sm:$0xff] %v246_v12  ;;  %249 = vst [vmem:[%s165_s5 + $0x68] sm:$0xff] %v248_v13 }
  0x1a PF: > { %255 = sbr.rel (!%p1289_p4) target bundleno = 31 (0x1f), region = 58  ;;  %s257_s6 = sand.u32 (%p1289_p4), 1, %s1226_s16  }
  0x1b   : > { %s1172_s7 = sshll.u32 (%p1289_p4), %s1230_s17, 3  ;;  %s1171_s8 = sshll.u32 (%p1289_p4), %s257_s6, 4 }
  0x1c   : > { %s261_s11 = scalar_lea.vmem (%p1289_p4), %s1758_s1, %s1172_s7  ;;  %s259_s12 = scalar_lea.vmem (%p1289_p4), [#allocation4], %s1171_s8 }
  0x1d   : > { %v292_v14 = vld [vmem:[%s261_s11] sm:$0xff] (%p1289_p4)  ;;  %v294_v15 = vld [vmem:[%s261_s11 + $0x10] sm:$0xff] (%p1289_p4) }
  0x1e   : > { %293 = vst [vmem:[%s259_s12] sm:$0xff] (%p1289_p4), %v292_v14  ;;  %295 = vst [vmem:[%s259_s12 + $0x8] sm:$0xff] (%p1289_p4), %v294_v15 }
  0x1f PF: > { %p1173_p7 = scmp.ge.s32.totalorder %s1230_s17, 1  ;;  %p312_p8 = scmp.lt.s32.totalorder %s1230_s17, 3 }
  0x21   : > { %p313_p9 = pnand %p1173_p7, %p312_p8 }
  0x23   : > { %316 = sbr.rel (%p313_p9) target bundleno = 217 (0xd9), region = 104 }
  0x28   : > { %s319_s13 = sand.u32 1, %s1222_s15   ;;  %v1232_v16 = vmov 0.0   ;;  %v450_v17 = vlaneseq  ;;  %vm837_vm0 = vcmask 1046528   ;;  %p360_p10 = scmp.lt.s32.totalorder %s1274_s18, 1 }
  0x29   : > { %366 = vst [vmem:[#allocation2] sm:$0xff] %v1232_v16  ;;  %367 = vst [vmem:[#allocation2 + $0x8] sm:$0x1] %v1232_v16  ;;  %s1317_s14 = smul.u32 112, %s319_s13  ;;  %s1321_s17 = sshll.u32 %s319_s13, 4 }
  0x2a   : > { %368 = vst [vmem:[#allocation2 + $0x90] sm:$0xff] %v1232_v16  ;;  %369 = vst [vmem:[#allocation2 + $0x98] sm:$0x1] %v1232_v16  ;;  %v451_v19 = vshrl.u32 %v450_v17, 7  ;;  %s328_s15 = scalar_lea.vmem [#allocation4], %s1321_s17  ;;  %s1176_s5 = sshll.u32 (%p1293_p5), %s1274_s18, 3 }
  0x2b   : > { %371 = vst [vmem:[#allocation2 + $0x80] sm:$0xff] %v1232_v16  ;;  %372 = vst [vmem:[#allocation2 + $0x88] sm:$0x1] %v1232_v16  ;;  %s1324_s20 = scalar_lea.vmem [#allocation3], %s1317_s14  ;;  %v404_v29 = vld [vmem:[%s328_s15] sm:$0xff]  ;;  %s1711_s30 = scalar_lea.vmem [#allocation5], %s1317_s14 }
  0x2c   : > { %373 = vst [vmem:[#allocation2 + $0x110] sm:$0xff] %v1232_v16  ;;  %374 = vst [vmem:[#allocation2 + $0x118] sm:$0x1] %v1232_v16  ;;  %v408_v18 = vld [vmem:[%s1324_s20] sm:$0x7f]  ;;  %v1334_v27 = vsub.s32 0, %v451_v19  ;;  %s988_s8 = scalar_lea.vmem (%p1293_p5), %s1761_s4, %s1176_s5 }
  0x2d   : > { %376 = vst [vmem:[#allocation2 + $0x10] sm:$0x1] %v1232_v16  ;;  %377 = vst [vmem:[#allocation2 + $0x20] sm:$0x1] %v1232_v16  ;;  %v409_v20 = vld [vmem:[%s1324_s20 + $0x8] sm:$0x7f] }
  0x2e   : > { %378 = vst [vmem:[#allocation2 + $0x30] sm:$0x1] %v1232_v16  ;;  %379 = vst [vmem:[#allocation2 + $0x40] sm:$0x1] %v1232_v16  ;;  %v410_v21 = vld [vmem:[%s1324_s20 + $0x10] sm:$0x7f]  ;;  %v1343_v36 = vrot.slane %v404_v29, %v1334_v27 }
  0x2f   : > { %380 = vst [vmem:[#allocation2 + $0x50] sm:$0x1] %v1232_v16  ;;  %381 = vst [vmem:[#allocation2 + $0x60] sm:$0x1] %v1232_v16  ;;  %v411_v22 = vld [vmem:[%s1324_s20 + $0x18] sm:$0x7f] }
  0x30   : > { %382 = vst [vmem:[#allocation2 + $0x70] sm:$0x1] %v1232_v16  ;;  %383 = vst [vmem:[#allocation2 + $0xa0] sm:$0x1] %v1232_v16  ;;  %v412_v23 = vld [vmem:[%s1324_s20 + $0x20] sm:$0x7f] }
  0x31   : > { %384 = vst [vmem:[#allocation2 + $0xb0] sm:$0x1] %v1232_v16  ;;  %385 = vst [vmem:[#allocation2 + $0xc0] sm:$0x1] %v1232_v16  ;;  %v413_v24 = vld [vmem:[%s1324_s20 + $0x28] sm:$0x7f] }
  0x32   : > { %386 = vst [vmem:[#allocation2 + $0xd0] sm:$0x1] %v1232_v16  ;;  %387 = vst [vmem:[#allocation2 + $0xe0] sm:$0x1] %v1232_v16  ;;  %v415_v25 = vld [vmem:[%s1324_s20 + $0x38] sm:$0x7f] }
  0x33   : > { %388 = vst [vmem:[#allocation2 + $0xf0] sm:$0x1] %v1232_v16  ;;  %389 = vst [vmem:[#allocation2 + $0x100] sm:$0x1] %v1232_v16  ;;  %v416_v26 = vld [vmem:[%s1324_s20 + $0x40] sm:$0x7f] }
  0x34   : > { %390 = vst [vmem:[#allocation2 + $0x18] sm:$0x1] %v1232_v16  ;;  %391 = vst [vmem:[#allocation2 + $0x28] sm:$0x1] %v1232_v16  ;;  %v484_v28 = vsub.s32 1, %v451_v19  ;;  %v530_v35 = vsub.s32 2, %v451_v19 }
  0x35   : > { %392 = vst [vmem:[#allocation2 + $0x38] sm:$0x1] %v1232_v16  ;;  %393 = vst [vmem:[#allocation2 + $0x48] sm:$0x1] %v1232_v16  ;;  %v417_v30 = vld [vmem:[%s1324_s20 + $0x48] sm:$0x7f] }
  0x36   : > { %394 = vst [vmem:[#allocation2 + $0x58] sm:$0x1] %v1232_v16  ;;  %395 = vst [vmem:[#allocation2 + $0x68] sm:$0x1] %v1232_v16  ;;  %v414_v31 = vld [vmem:[%s1324_s20 + $0x30] sm:$0x7f]  ;;  %v1345_v37 = vrot.slane %v404_v29, %v484_v28  ;;  %v1349_v50 = vrot.slane %v404_v29, %v530_v35 }
  0x37   : > { %396 = vst [vmem:[#allocation2 + $0x78] sm:$0x1] %v1232_v16  ;;  %397 = vst [vmem:[#allocation2 + $0xa8] sm:$0x1] %v1232_v16  ;;  %v418_v32 = vld [vmem:[%s1324_s20 + $0x50] sm:$0x7f] }
  0x38   : > { %398 = vst [vmem:[#allocation2 + $0xb8] sm:$0x1] %v1232_v16  ;;  %399 = vst [vmem:[#allocation2 + $0xc8] sm:$0x1] %v1232_v16  ;;  %v443_v33 = vld [vmem:[#allocation2 + $0x90] sm:$0x7f] }
  0x39   : > { %400 = vst [vmem:[#allocation2 + $0xd8] sm:$0x1] %v1232_v16  ;;  %401 = vst [vmem:[#allocation2 + $0xe8] sm:$0x1] %v1232_v16  ;;  %v475_v34 = vld [vmem:[#allocation2 + $0x91] sm:$0x7f]  ;;  %v461_v43 = vmul.f32 %v1343_v36, %v443_v33 }
  0x3a   : > { %402 = vst [vmem:[#allocation2 + $0xf8] sm:$0x1] %v1232_v16  ;;  %403 = vst [vmem:[#allocation2 + $0x108] sm:$0x1] %v1232_v16  ;;  %v715_v38 = vsub.s32 6, %v451_v19  ;;  %v668_v39 = vsub.s32 5, %v451_v19  ;;  %v493_v44 = vmul.f32 %v1345_v37, %v475_v34 }
  0x3b   : > { %422 = vst [vmem:[#allocation2 + $0x11] sm:$0x7f] %v408_v18  ;;  %423 = vst [vmem:[#allocation2 + $0x21] sm:$0x7f] %v409_v20  ;;  %v576_v40 = vsub.s32 3, %v451_v19  ;;  %v622_v41 = vsub.s32 4, %v451_v19 }
  0x3c   : > { %424 = vst [vmem:[#allocation2 + $0x31] sm:$0x7f] %v410_v21  ;;  %425 = vst [vmem:[#allocation2 + $0x41] sm:$0x7f] %v411_v22  ;;  %v521_v42 = vld [vmem:[#allocation2 + $0x92] sm:$0x7f]  ;;  %v1351_v53 = vrot.slane %v404_v29, %v715_v38  ;;  %v1357_v58 = vrot.slane %v404_v29, %v668_v39  ;;  %v507_v63 = vadd.f32 %v493_v44, %v461_v43 }
  0x3d   : > { %426 = vst [vmem:[#allocation2 + $0x51] sm:$0x7f] %v412_v23  ;;  %427 = vst [vmem:[#allocation2 + $0x61] sm:$0x7f] %v413_v24  ;;  %v761_v45 = vsub.s32 7, %v451_v19  ;;  %v1359_v59 = vrot.slane %v404_v29, %v576_v40  ;;  %v1361_v60 = vrot.slane %v404_v29, %v622_v41  ;;  %v539_v62 = vmul.f32 %v1349_v50, %v521_v42  ;;  %s361_s21 = scalar_select %p360_p10, %s1274_s18, 1 }
  0x3e   : > { %429 = vst [vmem:[#allocation2 + $0xa1] sm:$0x7f] %v415_v25  ;;  %430 = vst [vmem:[#allocation2 + $0xb1] sm:$0x7f] %v416_v26  ;;  %v705_v46 = vld [vmem:[#allocation2 + $0x80] sm:$0x7f] }
  0x3f   : > { %1766 = vst [vmem:[#allocation6_spill] sm:$0xff] %v1334_v27  ;;  %431 = vst [vmem:[#allocation2 + $0xc1] sm:$0x7f] %v417_v30  ;;  %v712_v47 = vld [vmem:[#allocation2 + $0x110] sm:$0x7f]  ;;  %v1364_v2 = vrot.slane %v404_v29, %v761_v45  ;;  %v1367_v3 = vmul.f32 %v1351_v53, %v705_v46  ;;  %v1391_v28 = vadd.f32 %v539_v62, %v507_v63  ;;  %s362_s26 = scalar_lea.vmem %s1759_s2, %s361_s21  ;;  %s365_s29 = scalar_lea.vmem %s1760_s3, %s361_s21 }
  0x40   : > { %428 = vst [vmem:[#allocation2 + $0x71] sm:$0x7f] %v414_v31  ;;  %432 = vst [vmem:[#allocation2 + $0xd1] sm:$0x7f] %v418_v32  ;;  %v751_v54 = vld [vmem:[#allocation2 + $0x81] sm:$0x7f]  ;;  %v1374_v14 = vmul.f32 %v1351_v53, %v712_v47 }
  0x41   : > { %v758_v55 = vld [vmem:[#allocation2 + $0x111] sm:$0x7f]  ;;  %v797_v56 = vld [vmem:[#allocation2 + $0x82] sm:$0x7f]  ;;  %v1377_v15 = vmul.f32 %v1364_v2, %v751_v54 }
  0x42   : > { %v437_v48 = vld [vmem:[#allocation2 + $0x10] sm:$0x7f]  ;;  %v438_v51 = vld [vmem:[#allocation2 + $0x20] sm:$0x7f]  ;;  %v1355_v57 = vld [vmem:[%s328_s15 + $0x8] ss:$0 sm:$0xff]  ;;  %v1380_v16 = vmul.f32 %v1364_v2, %v758_v55 }
  0x43   : > { %v469_v49 = vld [vmem:[#allocation2 + $0x11] sm:$0x7f]  ;;  %v470_v52 = vld [vmem:[#allocation2 + $0x21] sm:$0x7f]  ;;  %v455_v4 = vmul.f32 %v1343_v36, %v437_v48  ;;  %v456_v6 = vmul.f32 %v1343_v36, %v438_v51  ;;  %v1383_v17 = vmul.f32 %v1355_v57, %v797_v56 }
  0x44   : > { %v515_v61 = vld [vmem:[#allocation2 + $0x12] sm:$0x7f]  ;;  %v487_v5 = vmul.f32 %v1345_v37, %v469_v49  ;;  %v488_v7 = vmul.f32 %v1345_v37, %v470_v52  ;;  %v561_v8 = vld [vmem:[#allocation2 + $0x20] sm:$0x7f] }
  0x45   : > { %v439_v0 = vld [vmem:[#allocation2 + $0x30] sm:$0x7f]  ;;  %v516_v9 = vld [vmem:[#allocation2 + $0x22] sm:$0x7f]  ;;  %v533_v25 = vmul.f32 %v1349_v50, %v515_v61  ;;  %v1394_v32 = vmul.f32 %v1359_v59, %v561_v8 }
  0x46   : > { %v471_v1 = vld [vmem:[#allocation2 + $0x31] sm:$0x7f]  ;;  %v444_v12 = vld [vmem:[#allocation2 + $0xa0] sm:$0x7f]  ;;  %v457_v18 = vmul.f32 %v1343_v36, %v439_v0  ;;  %v534_v26 = vmul.f32 %v1349_v50, %v516_v9  ;;  %v502_v33 = vadd.f32 %v488_v7, %v456_v6  ;;  %v501_v41 = vadd.f32 %v487_v5, %v455_v4 }
  0x47   : > { %v562_v10 = vld [vmem:[#allocation2 + $0x30] sm:$0x7f]  ;;  %v476_v13 = vld [vmem:[#allocation2 + $0xa1] sm:$0x7f]  ;;  %v489_v19 = vmul.f32 %v1345_v37, %v471_v1  ;;  %v462_v22 = vmul.f32 %v1343_v36, %v444_v12 }
  0x48   : > { %v517_v11 = vld [vmem:[#allocation2 + $0x32] sm:$0x7f]  ;;  %v440_v21 = vld [vmem:[#allocation2 + $0x40] sm:$0x7f]  ;;  %v494_v23 = vmul.f32 %v1345_v37, %v476_v13  ;;  %v1397_v34 = vmul.f32 %v1359_v59, %v562_v10  ;;  %v547_v12 = vadd.f32 %v533_v25, %v501_v41 }
  0x49   : > { %v608_v20 = vld [vmem:[#allocation2 + $0x31] sm:$0x7f]  ;;  %v522_v24 = vld [vmem:[#allocation2 + $0xa2] sm:$0x7f]  ;;  %v535_v40 = vmul.f32 %v1349_v50, %v517_v11  ;;  %v503_v49 = vadd.f32 %v489_v19, %v457_v18  ;;  %v458_v51 = vmul.f32 %v1343_v36, %v440_v21 }
  0x4a   : > { %v472_v29 = vld [vmem:[#allocation2 + $0x41] sm:$0x7f]  ;;  %v445_v30 = vld [vmem:[#allocation2 + $0xb0] sm:$0x7f]  ;;  %v508_v44 = vadd.f32 %v494_v23, %v462_v22  ;;  %v540_v45 = vmul.f32 %v1349_v50, %v522_v24  ;;  %v1406_v56 = vmul.f32 %v1361_v60, %v608_v20 }
  0x4b   : > { %v477_v31 = vld [vmem:[#allocation2 + $0xb1] sm:$0x7f]  ;;  %v563_v35 = vld [vmem:[#allocation2 + $0x40] sm:$0x7f]  ;;  %v463_v46 = vmul.f32 %v1343_v36, %v445_v30  ;;  %v490_v52 = vmul.f32 %v1345_v37, %v472_v29 }
  0x4c   : > { %v609_v38 = vld [vmem:[#allocation2 + $0x41] sm:$0x7f]  ;;  %v441_v42 = vld [vmem:[#allocation2 + $0x50] sm:$0x7f]  ;;  %v495_v47 = vmul.f32 %v1345_v37, %v477_v31  ;;  %v1409_v61 = vmul.f32 %v1359_v59, %v563_v35  ;;  %v554_v19 = vadd.f32 %v540_v45, %v508_v44  ;;  %v1423_v35 = vadd.f32 %v534_v26, %v502_v33 }
  0x4d   : > { %v518_v39 = vld [vmem:[#allocation2 + $0x42] sm:$0x7f]  ;;  %v473_v43 = vld [vmem:[#allocation2 + $0x51] sm:$0x7f]  ;;  %v1412_v62 = vmul.f32 %v1361_v60, %v609_v38  ;;  %v459_v6 = vmul.f32 %v1343_v36, %v441_v42  ;;  %v504_v44 = vadd.f32 %v490_v52, %v458_v51 }
  0x4e   : > { %v523_v48 = vld [vmem:[#allocation2 + $0xb2] sm:$0x7f]  ;;  %v442_v54 = vld [vmem:[#allocation2 + $0x60] sm:$0x7f]  ;;  %v509_v1 = vadd.f32 %v495_v47, %v463_v46  ;;  %v491_v7 = vmul.f32 %v1345_v37, %v473_v43  ;;  %v536_v8 = vmul.f32 %v1349_v50, %v518_v39  ;;  %v1434_v47 = vadd.f32 %v535_v40, %v503_v49 }
  0x4f   : > { %v568_v55 = vld [vmem:[#allocation2 + $0xb0] sm:$0x7f]  ;;  %v474_v63 = vld [vmem:[#allocation2 + $0x61] sm:$0x7f]  ;;  %v541_v4 = vmul.f32 %v1349_v50, %v523_v48  ;;  %v460_v24 = vmul.f32 %v1343_v36, %v442_v54 }
  0x50   : > { %v567_v0 = vld [vmem:[#allocation2 + $0xa0] sm:$0x7f]  ;;  %v564_v13 = vld [vmem:[#allocation2 + $0x50] sm:$0x7f]  ;;  %v586_v20 = vmul.f32 %v1359_v59, %v568_v55  ;;  %v492_v29 = vmul.f32 %v1345_v37, %v474_v63  ;;  %v505_v54 = vadd.f32 %v491_v7, %v459_v6 }
  0x51   : > { %v569_v5 = vld [vmem:[#allocation2 + $0xc0] sm:$0x7f]  ;;  %v610_v18 = vld [vmem:[#allocation2 + $0x51] sm:$0x7f]  ;;  %v555_v21 = vadd.f32 %v541_v4, %v509_v1  ;;  %v585_v30 = vmul.f32 %v1359_v59, %v567_v0  ;;  %v1429_v45 = vmul.f32 %v1359_v59, %v564_v13 }
  0x52   : > { %v446_v9 = vld [vmem:[#allocation2 + $0xc0] sm:$0x7f]  ;;  %v587_v22 = vmul.f32 %v1359_v59, %v569_v5  ;;  %v519_v23 = vld [vmem:[#allocation2 + $0x52] sm:$0x7f]  ;;  %v1432_v46 = vmul.f32 %v1361_v60, %v610_v18  ;;  %v600_v51 = vadd.f32 %v586_v20, %v554_v19  ;;  %v506_v4 = vadd.f32 %v492_v29, %v460_v24 }
  0x53   : > { %v478_v10 = vld [vmem:[#allocation2 + $0xc1] sm:$0x7f]  ;;  %v614_v31 = vld [vmem:[#allocation2 + $0xb1] sm:$0x7f]  ;;  %v464_v39 = vmul.f32 %v1343_v36, %v446_v9  ;;  %v537_v55 = vmul.f32 %v1349_v50, %v519_v23  ;;  %v599_v5 = vadd.f32 %v585_v30, %v1391_v28  ;;  %v419_v9 = vld [vmem:[%s1324_s20 + $0x58] sm:$0x7f]  ;;  %v1446_v28 = vadd.f32 %v536_v8, %v504_v44 }
  0x54   : > { %v615_v11 = vld [vmem:[#allocation2 + $0xc1] sm:$0x7f]  ;;  %v496_v41 = vmul.f32 %v1345_v37, %v478_v10  ;;  %v601_v42 = vadd.f32 %v587_v22, %v555_v21  ;;  %v656_v26 = vld [vmem:[#allocation2 + $0x52] sm:$0x7f]  ;;  %v632_v52 = vmul.f32 %v1361_v60, %v614_v31  ;;  %433 = vst [vmem:[#allocation2 + $0xe1] sm:$0x7f] %v419_v9 }
  0x55   : > { %v520_v38 = vld [vmem:[#allocation2 + $0x62] sm:$0x7f]  ;;  %v633_v43 = vmul.f32 %v1361_v60, %v615_v11  ;;  %v660_v1 = vld [vmem:[#allocation2 + $0xb2] sm:$0x7f]  ;;  %v1449_v22 = vmul.f32 %v1357_v58, %v656_v26  ;;  %v551_v30 = vadd.f32 %v537_v55, %v505_v54 }
  0x56   : > { %v613_v25 = vld [vmem:[#allocation2 + $0xa1] sm:$0x7f]  ;;  %v538_v49 = vmul.f32 %v1349_v50, %v520_v38  ;;  %v421_v11 = vld [vmem:[%s1324_s20 + $0x68] sm:$0x7f]  ;;  %v510_v13 = vadd.f32 %v496_v41, %v464_v39  ;;  %v566_v19 = vld [vmem:[#allocation2 + $0x70] sm:$0x7f]  ;;  %v646_v31 = vadd.f32 %v632_v52, %v600_v51  ;;  %v678_v38 = vmul.f32 %v1357_v58, %v660_v1 }
  0x57   : > { %v524_v33 = vld [vmem:[#allocation2 + $0xc2] sm:$0x7f]  ;;  %v631_v40 = vmul.f32 %v1361_v60, %v613_v25  ;;  %v647_v6 = vadd.f32 %v633_v43, %v601_v42  ;;  %435 = vst [vmem:[#allocation2 + $0x101] sm:$0x7f] %v421_v11  ;;  %v570_v25 = vld [vmem:[#allocation2 + $0xd0] sm:$0x7f]  ;;  %v1455_v42 = vadd.f32 %v1394_v32, %v547_v12  ;;  %v584_v26 = vmul.f32 %v1359_v59, %v566_v19 }
  0x58   : > { %v661_v48 = vld [vmem:[#allocation2 + $0xc2] sm:$0x7f]  ;;  %v542_v7 = vmul.f32 %v1349_v50, %v524_v33  ;;  %v708_v39 = vld [vmem:[#allocation2 + $0xd0] sm:$0x7f]  ;;  %v552_v43 = vadd.f32 %v538_v49, %v506_v4  ;;  %v588_v32 = vmul.f32 %v1359_v59, %v570_v25 }
  0x59   : > { %v565_v63 = vld [vmem:[#allocation2 + $0x60] sm:$0x7f]  ;;  %v679_v18 = vmul.f32 %v1357_v58, %v661_v48  ;;  %v612_v51 = vld [vmem:[#allocation2 + $0x71] sm:$0x7f]  ;;  %v726_v4 = vmul.f32 %v1351_v53, %v708_v39 }
  0x5a   : > { %v611_v0 = vld [vmem:[#allocation2 + $0x61] sm:$0x7f]  ;;  %v583_v23 = vmul.f32 %v1359_v59, %v565_v63  ;;  %v645_v63 = vadd.f32 %v631_v40, %v599_v5  ;;  %v556_v55 = vadd.f32 %v542_v7, %v510_v13  ;;  %v447_v52 = vld [vmem:[#allocation2 + $0xd0] sm:$0x7f]  ;;  %v692_v40 = vadd.f32 %v678_v38, %v646_v31 }
  0x5b   : > { %v420_v10 = vld [vmem:[%s1324_s20 + $0x60] sm:$0x7f]  ;;  %v629_v24 = vmul.f32 %v1361_v60, %v611_v0  ;;  %v693_v0 = vadd.f32 %v679_v18, %v647_v6 }
  0x5c   : > { %434 = vst [vmem:[#allocation2 + $0xf1] sm:$0x7f] %v420_v10  ;;  %v436_v20 = vld [vmem:[#allocation2] sm:$0x7f]  ;;  %v479_v1 = vld [vmem:[#allocation2 + $0xd1] sm:$0x7f]  ;;  %v597_v19 = vadd.f32 %v583_v23, %v551_v30 }
  0x5d   : > { %v468_v21 = vld [vmem:[#allocation2 + $0x1] sm:$0x7f]  ;;  %v454_v33 = vmul.f32 %v1343_v36, %v436_v20  ;;  %v706_v9 = vld [vmem:[#allocation2 + $0xb0] sm:$0x7f]  ;;  %v598_v20 = vadd.f32 %v584_v26, %v552_v43  ;;  %v497_v25 = vmul.f32 %v1345_v37, %v479_v1 }
  0x5e   : > { %v659_v29 = vld [vmem:[#allocation2 + $0xa2] sm:$0x7f]  ;;  %v486_v48 = vmul.f32 %v1345_v37, %v468_v21  ;;  %v616_v12 = vld [vmem:[#allocation2 + $0xd1] sm:$0x7f]  ;;  %v630_v21 = vmul.f32 %v1361_v60, %v612_v51 }
  0x5f   : > { %v514_v41 = vld [vmem:[#allocation2 + $0x2] sm:$0x7f]  ;;  %v677_v54 = vmul.f32 %v1357_v58, %v659_v29  ;;  %v754_v49 = vld [vmem:[#allocation2 + $0xd1] sm:$0x7f]  ;;  %v465_v29 = vmul.f32 %v1343_v36, %v447_v52  ;;  %v634_v30 = vmul.f32 %v1361_v60, %v616_v12  ;;  %v1475_v52 = vadd.f32 %v629_v24, %v597_v19 }
  0x60   : > { %v657_v8 = vld [vmem:[#allocation2 + $0x62] sm:$0x7f]  ;;  %v500_v10 = vadd.f32 %v486_v48, %v454_v33  ;;  %v532_v11 = vmul.f32 %v1349_v50, %v514_v41  ;;  %v560_v6 = vld [vmem:[#allocation2 + $0x10] sm:$0x7f]  ;;  %v724_v41 = vmul.f32 %v1351_v53, %v706_v9  ;;  %v772_v31 = vmul.f32 %v1364_v2, %v754_v49 }
  0x61   : > { %v707_v44 = vld [vmem:[#allocation2 + $0xc0] sm:$0x7f]  ;;  %v1465_v5 = vmul.f32 %v1357_v58, %v657_v8  ;;  %v752_v7 = vld [vmem:[#allocation2 + $0xb1] sm:$0x7f]  ;;  %v691_v39 = vadd.f32 %v677_v54, %v645_v63  ;;  %v740_v33 = vadd.f32 %v726_v4, %v693_v0  ;;  %v578_v51 = vmul.f32 %v1359_v59, %v560_v6 }
  0x62   : > { %v725_v13 = vmul.f32 %v1351_v53, %v707_v44  ;;  %v753_v18 = vld [vmem:[#allocation2 + $0xc1] sm:$0x7f]  ;;  %v658_v23 = vld [vmem:[#allocation2 + $0x72] sm:$0x7f]  ;;  %v602_v44 = vadd.f32 %v588_v32, %v556_v55  ;;  %v546_v26 = vadd.f32 %v532_v11, %v500_v10  ;;  %v1478_v63 = vmul.f32 %v1364_v2, %v752_v7 }
  0x63   : > { %v525_v38 = vld [vmem:[#allocation2 + $0xd2] sm:$0x7f]  ;;  %v771_v1 = vmul.f32 %v1364_v2, %v753_v18  ;;  %v799_v9 = vld [vmem:[#allocation2 + $0xc2] sm:$0x7f]  ;;  %v644_v12 = vadd.f32 %v630_v21, %v598_v20  ;;  %v511_v27 = vadd.f32 %v497_v25, %v465_v29  ;;  %v676_v55 = vmul.f32 %v1357_v58, %v658_v23 }
  0x64   : > { %v798_v8 = vld [vmem:[#allocation2 + $0xb2] sm:$0x7f]  ;;  %v739_v54 = vadd.f32 %v725_v13, %v692_v40  ;;  %v543_v0 = vmul.f32 %v1349_v50, %v525_v38  ;;  %v1483_v32 = vadd.f32 %v724_v41, %v691_v39  ;;  %v607_v19 = vld [vmem:[#allocation2 + $0x21] sm:$0x7f]  ;;  %v648_v40 = vadd.f32 %v634_v30, %v602_v44 }
  0x65   : > { %v662_v48 = vld [vmem:[#allocation2 + $0xd2] sm:$0x7f]  ;;  %v1486_v4 = vmul.f32 %v1355_v57, %v798_v8  ;;  %v786_v13 = vadd.f32 %v772_v31, %v740_v33  ;;  %v448_v6 = vld [vmem:[#allocation2 + $0xe0] sm:$0x7f]  ;;  %v592_v20 = vadd.f32 %v578_v51, %v546_v26  ;;  %v594_v21 = vadd.f32 %v1397_v34, %v1423_v35 }
  0x66   : > { %v800_v43 = vld [vmem:[#allocation2 + $0xd2] sm:$0x7f]  ;;  %v680_v24 = vmul.f32 %v1357_v58, %v662_v48  ;;  %v480_v7 = vld [vmem:[#allocation2 + $0xe1] sm:$0x7f]  ;;  %v1492_v29 = vadd.f32 %v771_v1, %v739_v54  ;;  %v1495_v25 = vmul.f32 %v1355_v57, %v799_v9  ;;  %v595_v41 = vadd.f32 %v1409_v61, %v1434_v47 }
  0x67   : > { %v704_v49 = vld [vmem:[#allocation2 + $0x70] sm:$0x7f]  ;;  %v818_v10 = vmul.f32 %v1355_v57, %v800_v43  ;;  %v571_v18 = vld [vmem:[#allocation2 + $0xe0] sm:$0x7f]  ;;  %v557_v23 = vadd.f32 %v543_v0, %v511_v27  ;;  %v1502_v30 = vadd.f32 %v676_v55, %v644_v12  ;;  %v596_v8 = vadd.f32 %v1429_v45, %v1446_v28 }
  0x68   : > { %v606_v11 = vld [vmem:[#allocation2 + $0x11] sm:$0x7f]  ;;  %v1498_v39 = vmul.f32 %v1351_v53, %v704_v49  ;;  %v617_v31 = vld [vmem:[#allocation2 + $0xe1] sm:$0x7f]  ;;  %v466_v44 = vmul.f32 %v1343_v36, %v448_v6  ;;  %v498_v33 = vmul.f32 %v1345_v37, %v480_v7  ;;  %v589_v48 = vmul.f32 %v1359_v59, %v571_v18 }
  0x69   : > { %v709_v38 = vld [vmem:[#allocation2 + $0xe0] sm:$0x7f]  ;;  %v624_v34 = vmul.f32 %v1361_v60, %v606_v11  ;;  %v652_v35 = vld [vmem:[#allocation2 + $0x12] sm:$0x7f]  ;;  %v625_v61 = vmul.f32 %v1361_v60, %v607_v19  ;;  %v694_v26 = vadd.f32 %v680_v24, %v648_v40  ;;  %v1511_v51 = vadd.f32 %v818_v10, %v786_v13 }
  0x6a   : > { %v755_v43 = vld [vmem:[#allocation2 + $0xe1] sm:$0x7f]  ;;  %v654_v47 = vld [vmem:[#allocation2 + $0x32] sm:$0x7f]  ;;  %v640_v45 = vadd.f32 %v1406_v56, %v594_v21  ;;  %v635_v9 = vmul.f32 %v1361_v60, %v617_v31  ;;  %v727_v12 = vmul.f32 %v1351_v53, %v709_v38  ;;  %v641_v55 = vadd.f32 %v1412_v62, %v595_v41 }
  0x6b   : > { %v653_v27 = vld [vmem:[#allocation2 + $0x22] sm:$0x7f]  ;;  %v638_v1 = vadd.f32 %v624_v34, %v592_v20  ;;  %v639_v49 = vadd.f32 %v625_v61, %v1455_v42  ;;  %v1519_v0 = vmul.f32 %v1364_v2, %v755_v43  ;;  %v449_v24 = vld [vmem:[#allocation2 + $0xf0] sm:$0x7f]  ;;  %v670_v19 = vmul.f32 %v1357_v58, %v652_v35 }
  0x6c   : > { %v526_v54 = vld [vmem:[#allocation2 + $0xe2] sm:$0x7f]  ;;  %v481_v10 = vld [vmem:[#allocation2 + $0xf1] sm:$0x7f]  ;;  %v671_v40 = vmul.f32 %v1357_v58, %v653_v27  ;;  %v672_v56 = vmul.f32 %v1357_v58, %v654_v47  ;;  %v512_v13 = vadd.f32 %v498_v33, %v466_v44  ;;  %v603_v6 = vadd.f32 %v589_v48, %v557_v23 }
  0x6d   : > { %v655_v28 = vld [vmem:[#allocation2 + $0x42] sm:$0x7f]  ;;  %v544_v7 = vmul.f32 %v1349_v50, %v526_v54  ;;  %v642_v42 = vadd.f32 %v1432_v46, %v596_v8  ;;  %v700_v62 = vld [vmem:[#allocation2 + $0x30] sm:$0x7f]  ;;  %v684_v38 = vadd.f32 %v670_v19, %v638_v1  ;;  %v741_v43 = vadd.f32 %v727_v12, %v694_v26 }
  0x6e   : > { %v663_v11 = vld [vmem:[#allocation2 + $0xe2] sm:$0x7f]  ;;  %v673_v31 = vmul.f32 %v1357_v58, %v655_v28  ;;  %v685_v34 = vadd.f32 %v671_v40, %v639_v49  ;;  %v686_v35 = vadd.f32 %v672_v56, %v640_v45  ;;  %v467_v23 = vmul.f32 %v1343_v36, %v449_v24  ;;  %v702_v33 = vld [vmem:[#allocation2 + $0x50] sm:$0x7f] }
  0x6f   : > { %v699_v18 = vld [vmem:[#allocation2 + $0x20] sm:$0x7f]  ;;  %v1528_v61 = vmul.f32 %v1357_v58, %v663_v11  ;;  %v499_v44 = vmul.f32 %v1345_v37, %v481_v10  ;;  %v527_v46 = vld [vmem:[#allocation2 + $0xf2] sm:$0x7f]  ;;  %v718_v27 = vmul.f32 %v1351_v53, %v700_v62  ;;  %v1535_v54 = vadd.f32 %v635_v9, %v603_v6 }
  0x70   : > { %v701_v20 = vld [vmem:[#allocation2 + $0x40] sm:$0x7f]  ;;  %v687_v8 = vadd.f32 %v673_v31, %v641_v55  ;;  %v717_v48 = vmul.f32 %v1351_v53, %v699_v18  ;;  %v688_v1 = vadd.f32 %v1449_v22, %v642_v42  ;;  %v746_v37 = vld [vmem:[#allocation2 + $0x31] sm:$0x7f]  ;;  %v720_v11 = vmul.f32 %v1351_v53, %v702_v33 }
  0x71   : > { %v703_v21 = vld [vmem:[#allocation2 + $0x60] sm:$0x7f]  ;;  %v719_v47 = vmul.f32 %v1351_v53, %v701_v20  ;;  %v572_v12 = vld [vmem:[#allocation2 + $0xf0] sm:$0x7f]  ;;  %v732_v10 = vadd.f32 %v718_v27, %v685_v34  ;;  %v558_v19 = vadd.f32 %v544_v7, %v512_v13  ;;  %v513_v40 = vadd.f32 %v499_v44, %v467_v23 }
  0x72   : > { %v801_v41 = vld [vmem:[#allocation2 + $0xe2] sm:$0x7f]  ;;  %v721_v36 = vmul.f32 %v1351_v53, %v703_v21  ;;  %v618_v49 = vld [vmem:[#allocation2 + $0xf1] sm:$0x7f]  ;;  %v731_v24 = vadd.f32 %v717_v48, %v684_v38  ;;  %v545_v56 = vmul.f32 %v1349_v50, %v527_v46  ;;  %v689_v22 = vadd.f32 %v1465_v5, %v1475_v52 }
  0x73   : > { %v1538_v26 = vmul.f32 %v1355_v57, %v801_v41  ;;  %v745_v45 = vld [vmem:[#allocation2 + $0x21] sm:$0x7f]  ;;  %v733_v9 = vadd.f32 %v719_v47, %v686_v35  ;;  %v748_v6 = vld [vmem:[#allocation2 + $0x51] sm:$0x7f]  ;;  %v734_v18 = vadd.f32 %v720_v11, %v687_v8  ;;  %v764_v21 = vmul.f32 %v1364_v2, %v746_v37 }
  0x74   : > { %v747_v28 = vld [vmem:[#allocation2 + $0x41] sm:$0x7f]  ;;  %v750_v42 = vld [vmem:[#allocation2 + $0x71] sm:$0x7f]  ;;  %v763_v20 = vmul.f32 %v1364_v2, %v745_v45  ;;  %v590_v31 = vmul.f32 %v1359_v59, %v572_v12  ;;  %v636_v13 = vmul.f32 %v1361_v60, %v618_v49  ;;  %v735_v50 = vadd.f32 %v721_v36, %v688_v1 }
  0x75   : > { %v573_v55 = vld [vmem:[#allocation2 + $0x100] sm:$0x7f]  ;;  %v765_v41 = vmul.f32 %v1364_v2, %v747_v28  ;;  %v792_v34 = vld [vmem:[#allocation2 + $0x32] sm:$0x7f]  ;;  %v766_v52 = vmul.f32 %v1364_v2, %v748_v6  ;;  %v778_v23 = vadd.f32 %v764_v21, %v732_v10  ;;  %v559_v33 = vadd.f32 %v545_v56, %v513_v40 }
  0x76   : > { %v749_v62 = vld [vmem:[#allocation2 + $0x61] sm:$0x7f]  ;;  %v591_v7 = vmul.f32 %v1359_v59, %v573_v55  ;;  %v777_v35 = vadd.f32 %v763_v20, %v731_v24  ;;  %v736_v46 = vadd.f32 %v1498_v39, %v689_v22  ;;  %v768_v48 = vmul.f32 %v1364_v2, %v750_v42  ;;  %v794_v27 = vld [vmem:[#allocation2 + $0x52] sm:$0x7f] }
  0x77   : > { %v791_v38 = vld [vmem:[#allocation2 + $0x22] sm:$0x7f]  ;;  %v779_v44 = vadd.f32 %v765_v41, %v733_v9  ;;  %v767_v8 = vmul.f32 %v1364_v2, %v749_v62  ;;  %v780_v45 = vadd.f32 %v766_v52, %v734_v18  ;;  %v810_v36 = vmul.f32 %v1355_v57, %v792_v34  ;;  %v796_v55 = vld [vmem:[#allocation2 + $0x72] sm:$0x7f] }
  0x78   : > { %v793_v5 = vld [vmem:[#allocation2 + $0x42] sm:$0x7f]  ;;  %v809_v1 = vmul.f32 %v1355_v57, %v791_v38  ;;  %v1560_v28 = vadd.f32 %v1519_v0, %v741_v43  ;;  %v604_v12 = vadd.f32 %v590_v31, %v558_v19  ;;  %v737_v39 = vadd.f32 %v1367_v3, %v1502_v30  ;;  %v710_v11 = vld [vmem:[#allocation2 + $0xf0] sm:$0x7f] }
  0x79   : > { %v619_v47 = vld [vmem:[#allocation2 + $0x101] sm:$0x7f]  ;;  %v811_v37 = vmul.f32 %v1355_v57, %v793_v5  ;;  %v781_v49 = vadd.f32 %v767_v8, %v735_v50  ;;  %v664_v24 = vld [vmem:[#allocation2 + $0xf2] sm:$0x7f]  ;;  %v812_v10 = vmul.f32 %v1355_v57, %v794_v27  ;;  %v1567_v40 = vadd.f32 %v810_v36, %v778_v23 }
  0x7a   : > { %v795_v59 = vld [vmem:[#allocation2 + $0x62] sm:$0x7f]  ;;  %v1565_v9 = vadd.f32 %v809_v1, %v777_v35  ;;  %v605_v22 = vadd.f32 %v591_v7, %v559_v33  ;;  %v637_v0 = vmul.f32 %v1361_v60, %v619_v47  ;;  %v782_v43 = vadd.f32 %v768_v48, %v736_v46  ;;  %v756_v31 = vld [vmem:[#allocation2 + $0xf1] sm:$0x7f] }
  0x7b   : > { %v1569_v56 = vadd.f32 %v811_v37, %v779_v44  ;;  %v813_v19 = vmul.f32 %v1355_v57, %v795_v59  ;;  %v665_v6 = vld [vmem:[#allocation2 + $0x102] sm:$0x7f]  ;;  %v814_v3 = vmul.f32 %v1355_v57, %v796_v55  ;;  %v1574_v30 = vadd.f32 %v812_v10, %v780_v45  ;;  %v802_v36 = vld [vmem:[#allocation2 + $0xf2] sm:$0x7f] }
  0x7c   : > { %v838_v42 = vsel %vm837_vm0, %v1565_v9, 0.0  ;;  %v839_v18 = vsel %vm837_vm0, %v1567_v40, 0.0  ;;  %v695_v62 = vadd.f32 %v1528_v61, %v1535_v54  ;;  %v728_v20 = vmul.f32 %v1351_v53, %v710_v11  ;;  %v711_v5 = vld [vmem:[#allocation2 + $0x100] sm:$0x7f] }
  0x7d   : > { %v682_v60 = vmul.f32 %v1357_v58, %v664_v24  ;;  %v840_v21 = vadd.f32 %v839_v18, %v838_v42  ;;  %v650_v41 = vadd.f32 %v636_v13, %v604_v12  ;;  %v783_v7 = vadd.f32 %v1377_v15, %v737_v39  ;;  %v757_v27 = vld [vmem:[#allocation2 + $0x101] sm:$0x7f] }
  0x7e   : > { %v1585_v50 = vadd.f32 %v813_v19, %v781_v49  ;;  %v841_v38 = vsel %vm837_vm0, %v1569_v56, 0.0  ;;  %v651_v34 = vadd.f32 %v637_v0, %v605_v22  ;;  %v683_v52 = vmul.f32 %v1357_v58, %v665_v6 }
  0x7f   : > { %v842_v35 = vadd.f32 %v841_v38, %v840_v21  ;;  %v871_v61 = vmul.f32 %v1565_v9, %v1565_v9  ;;  %v784_v54 = vadd.f32 %v1478_v63, %v1483_v32  ;;  %v1594_v13 = vadd.f32 %v814_v3, %v782_v43  ;;  %v803_v43 = vld [vmem:[#allocation2 + $0x102] sm:$0x7f]  ;;  %v804_v3 = vld [vmem:[#allocation2 + $0x112] sm:$0x7f] }
  0x80   : > { %v843_v15 = vsel %vm837_vm0, %v1574_v30, 0.0  ;;  %v872_v23 = vmul.f32 %v1567_v40, %v1567_v40  ;;  %v742_v44 = vadd.f32 %v728_v20, %v695_v62  ;;  %v774_v33 = vmul.f32 %v1364_v2, %v756_v31 }
  0x81   : > { %v844_v46 = vadd.f32 %v843_v15, %v842_v35  ;;  %v873_v58 = vmul.f32 %v1569_v56, %v1569_v56  ;;  %v696_v8 = vadd.f32 %v682_v60, %v650_v41  ;;  %v729_v48 = vmul.f32 %v1351_v53, %v711_v5 }
  0x82   : > { %v1605_v63 = vadd.f32 %v1383_v17, %v783_v7  ;;  %v845_v32 = vsel %vm837_vm0, %v1585_v50, 0.0  ;;  %v874_v45 = vmul.f32 %v1574_v30, %v1574_v30  ;;  %v885_v59 = vsel %vm837_vm0, %v871_v61, 0.0 }
  0x83   : > { %v846_v47 = vadd.f32 %v845_v32, %v844_v46  ;;  %v886_v1 = vsel %vm837_vm0, %v872_v23, 0.0  ;;  %v697_v37 = vadd.f32 %v683_v52, %v651_v34  ;;  %v1614_v12 = vadd.f32 %v1486_v4, %v784_v54 }
  0x84   : > { %v847_v53 = vsel %vm837_vm0, %v1594_v13, 0.0  ;;  %v887_v17 = vadd.f32 %v886_v1, %v885_v59  ;;  %v775_v39 = vmul.f32 %v1364_v2, %v757_v27  ;;  %v875_v55 = vmul.f32 %v1585_v50, %v1585_v50 }
  0x85   : > { %v848_v49 = vadd.f32 %v847_v53, %v846_v47  ;;  %v888_v11 = vsel %vm837_vm0, %v873_v58, 0.0  ;;  %v743_v24 = vadd.f32 %v729_v48, %v696_v8  ;;  %v1624_v10 = vadd.f32 %v1495_v25, %v1492_v29 }
  0x86   : > { %v849_v4 = vsel %vm837_vm0, %v1605_v63, 0.0  ;;  %v889_v22 = vadd.f32 %v888_v11, %v887_v17  ;;  %v820_v0 = vmul.f32 %v1355_v57, %v802_v36  ;;  %v876_v2 = vmul.f32 %v1594_v13, %v1594_v13 }
  0x87   : > { %v850_v19 = vadd.f32 %v849_v4, %v848_v49  ;;  %v890_v6 = vsel %vm837_vm0, %v874_v45, 0.0  ;;  %v788_v42 = vadd.f32 %v774_v33, %v742_v44  ;;  %v744_v18 = vadd.f32 %v1374_v14, %v697_v37 }
  0x88   : > { %v851_v29 = vsel %vm837_vm0, %v1614_v12, 0.0  ;;  %v891_v25 = vadd.f32 %v890_v6, %v889_v22  ;;  %v1637_v62 = vadd.f32 %v1538_v26, %v1560_v28  ;;  %v877_v60 = vmul.f32 %v1605_v63, %v1605_v63 }
  0x89   : > { %v852_v20 = vadd.f32 %v851_v29, %v850_v19  ;;  %v892_v21 = vsel %vm837_vm0, %v875_v55, 0.0  ;;  %v789_v41 = vadd.f32 %v775_v39, %v743_v24  ;;  %v821_v31 = vmul.f32 %v1355_v57, %v803_v43 }
  0x8a   : > { %v853_v14 = vsel %vm837_vm0, %v1624_v10, 0.0  ;;  %v893_v7 = vadd.f32 %v892_v21, %v891_v25  ;;  %v822_v38 = vmul.f32 %v1355_v57, %v804_v3  ;;  %v878_v26 = vmul.f32 %v1614_v12, %v1614_v12 }
  0x8b   : > { %v854_v34 = vadd.f32 %v853_v14, %v852_v20  ;;  %v894_v28 = vsel %vm837_vm0, %v876_v2, 0.0  ;;  %v1649_v5 = vadd.f32 %v820_v0, %v788_v42  ;;  %v790_v52 = vadd.f32 %v1380_v16, %v744_v18 }
  0x8c   : > { %v855_v35 = vsel %vm837_vm0, %v1511_v51, 0.0  ;;  %v895_v61 = vadd.f32 %v894_v28, %v893_v7  ;;  %v879_v15 = vmul.f32 %v1624_v10, %v1624_v10  ;;  %v896_v57 = vsel %vm837_vm0, %v877_v60, 0.0 }
  0x8d   : > { %v856_v54 = vadd.f32 %v855_v35, %v854_v34  ;;  %v1657_v23 = vadd.f32 %v821_v31, %v789_v41  ;;  %v857_v44 = vsel %vm837_vm0, %v1637_v62, 0.0  ;;  %v880_v16 = vmul.f32 %v1511_v51, %v1511_v51 }
  0x8e   : > { %v897_v33 = vadd.f32 %v896_v57, %v895_v61  ;;  %v898_v58 = vsel %vm837_vm0, %v878_v26, 0.0  ;;  %v1664_v8 = vadd.f32 %v822_v38, %v790_v52  ;;  %v859_v48 = vsel %vm837_vm0, %v1649_v5, 0.0  ;;  %v406_v61 = vld [vmem:[%s362_s26] sm:$0x1] }
  0x8f   : > { %v858_v46 = vadd.f32 %v857_v44, %v856_v54  ;;  %v881_v47 = vmul.f32 %v1637_v62, %v1637_v62  ;;  %v900_v45 = vsel %vm837_vm0, %v879_v15, 0.0  ;;  %v861_v59 = vsel %vm837_vm0, %v1657_v23, 0.0  ;;  %v407_v57 = vld [vmem:[%s365_s29] sm:$0x1] }
  0x90   : > { %v899_v27 = vadd.f32 %v898_v58, %v897_v33  ;;  %v882_v37 = vmul.f32 %v1649_v5, %v1649_v5  ;;  %v902_v53 = vsel %vm837_vm0, %v880_v16, 0.0  ;;  %v863_v17 = vsel %vm837_vm0, %v1664_v8, 0.0  ;;  %v1767_v33 = vld [vmem:[#allocation6_spill] sm:$0xff] }
  0x91   : > { %v860_v32 = vadd.f32 %v859_v48, %v858_v46  ;;  %v883_v49 = vmul.f32 %v1657_v23, %v1657_v23  ;;  %v904_v11 = vsel %vm837_vm0, %v881_v47, 0.0  ;;  %v884_v4 = vmul.f32 %v1664_v8, %v1664_v8 }
  0x92   : > { %v901_v1 = vadd.f32 %v900_v45, %v899_v27  ;;  %v906_v0 = vsel %vm837_vm0, %v882_v37, 0.0 }
  0x93   : > { %v862_v36 = vadd.f32 %v861_v59, %v860_v32  ;;  %v908_v2 = vsel %vm837_vm0, %v883_v49, 0.0  ;;  %v910_v42 = vsel %vm837_vm0, %v884_v4, 0.0 }
  0x94   : > { %v903_v39 = vadd.f32 %v902_v53, %v901_v1 }
  0x95   : > { %v864_v55 = vadd.f32 %v863_v17, %v862_v36 }
  0x96   : > { %v905_v24 = vadd.f32 %v904_v11, %v903_v39 }
  0x97   : > { %v865_v22 = vrot.slane %v864_v55, 4 }
  0x98   : > { %v907_v43 = vadd.f32 %v906_v0, %v905_v24 }
  0x99   : > { %v866_v19 = vadd.f32 %v865_v22, %v864_v55 }
  0x9a   : > { %v909_v6 = vadd.f32 %v908_v2, %v907_v43 }
  0x9b   : > { %v867_v3 = vrot.slane %v866_v19, 2 }
  0x9c   : > { %v911_v18 = vadd.f32 %v910_v42, %v909_v6 }
  0x9d   : > { %v868_v29 = vadd.f32 %v867_v3, %v866_v19 }
  0x9e   : > { %v912_v25 = vrot.slane %v911_v18, 4 }
  0x9f   : > { %v869_v20 = vrot.slane %v868_v29, 1 }
  0xa0   : > { %v913_v60 = vadd.f32 %v912_v25, %v911_v18 }
  0xa1   : > { %v870_v21 = vadd.f32 %v869_v20, %v868_v29 }
  0xa2   : > { %v914_v41 = vrot.slane %v913_v60, 2 }
  0xa3   : > { %v918_v14 = vmul.f32 0.010204081, %v870_v21 }
  0xa4   : > { %v915_v31 = vadd.f32 %v914_v41, %v913_v60 }
  0xa5   : > { %v920_v34 = vmul.f32 %v918_v14, %v918_v14 }
  0xa6   : > { %v916_v7 = vrot.slane %v915_v31, 1 }
  0xa8   : > { %v917_v38 = vadd.f32 %v916_v7, %v915_v31 }
  0xaa   : > { %v919_v26 = vmul.f32 0.010204081, %v917_v38 }
  0xac   : > { %v921_v28 = vsub.f32 %v919_v26, %v920_v34 }
  0xae   : > { %v922_v52 = vmax.f32 %v921_v28, 0.0 }
  0xb0   : > { %v923_v35 = vadd.f32 1e-05, %v922_v52 }
  0xb2   : > { %1206 = vrsqrt.f32 %v923_v35 }
  0xbf   : > { %v1207_v54 = vpop.eup %1206 }
  0xc0   : > { %v925_v15 = vmul.f32 %v1207_v54, %v406_v61 }
  0xc2   : > { %v926_v44 = vmul.f32 %v925_v15, %v918_v14  ;;  %v931_v46 = vrot.slane %v925_v15, %v1767_v33 }
  0xc4   : > { %v927_v16 = vsub.f32 %v407_v57, %v926_v44  ;;  %v932_v58 = vmul.f32 %v931_v46, %v1565_v9  ;;  %v933_v48 = vmul.f32 %v931_v46, %v1567_v40  ;;  %v934_v27 = vmul.f32 %v931_v46, %v1569_v56 }
  0xc5   : > { %v935_v32 = vmul.f32 %v931_v46, %v1574_v30  ;;  %v936_v47 = vmul.f32 %v931_v46, %v1585_v50  ;;  %v937_v45 = vmul.f32 %v931_v46, %v1594_v13  ;;  %v938_v59 = vmul.f32 %v931_v46, %v1605_v63 }
  0xc6   : > { %v950_v1 = vrot.slane %v927_v16, %v1767_v33  ;;  %v939_v36 = vmul.f32 %v931_v46, %v1614_v12  ;;  %v940_v37 = vmul.f32 %v931_v46, %v1624_v10  ;;  %v941_v9 = vmul.f32 %v931_v46, %v1511_v51 }
  0xc7   : > { %v942_v40 = vmul.f32 %v931_v46, %v1637_v62  ;;  %v943_v56 = vmul.f32 %v931_v46, %v1649_v5  ;;  %v944_v30 = vmul.f32 %v931_v46, %v1657_v23  ;;  %v945_v50 = vmul.f32 %v931_v46, %v1664_v8 }
  0xc8   : > { %v952_v13 = vadd.f32 %v950_v1, %v932_v58  ;;  %v953_v53 = vadd.f32 %v950_v1, %v933_v48  ;;  %v954_v63 = vadd.f32 %v950_v1, %v934_v27  ;;  %v955_v17 = vadd.f32 %v950_v1, %v935_v32 }
  0xc9   : > { %v956_v39 = vadd.f32 %v950_v1, %v936_v47  ;;  %v957_v49 = vadd.f32 %v950_v1, %v937_v45  ;;  %v958_v55 = vadd.f32 %v950_v1, %v938_v59  ;;  %v959_v12 = vadd.f32 %v950_v1, %v939_v36 }
  0xca   : > { %966 = vst [vmem:[%s1711_s30] sm:$0x7f] %v952_v13  ;;  %967 = vst [vmem:[%s1711_s30 + $0x8] sm:$0x7f] %v953_v53  ;;  %v960_v51 = vadd.f32 %v950_v1, %v940_v37  ;;  %v961_v10 = vadd.f32 %v950_v1, %v941_v9  ;;  %v962_v62 = vadd.f32 %v950_v1, %v942_v40 }
  0xcb   : > { %968 = vst [vmem:[%s1711_s30 + $0x10] sm:$0x7f] %v954_v63  ;;  %969 = vst [vmem:[%s1711_s30 + $0x18] sm:$0x7f] %v955_v17  ;;  %v963_v5 = vadd.f32 %v950_v1, %v943_v56  ;;  %v964_v23 = vadd.f32 %v950_v1, %v944_v30  ;;  %v965_v8 = vadd.f32 %v950_v1, %v945_v50 }
  0xcc   : > { %970 = vst [vmem:[%s1711_s30 + $0x20] sm:$0x7f] %v956_v39  ;;  %971 = vst [vmem:[%s1711_s30 + $0x28] sm:$0x7f] %v957_v49  ;;  %986 = sbr.rel (!%p1293_p5) target bundleno = 217 (0xd9), region = 116 }
  0xcd   : > { %972 = vst [vmem:[%s1711_s30 + $0x30] sm:$0x7f] %v958_v55  ;;  %973 = vst [vmem:[%s1711_s30 + $0x38] sm:$0x7f] %v959_v12 }
  0xce   : > { %974 = vst [vmem:[%s1711_s30 + $0x40] sm:$0x7f] %v960_v51  ;;  %975 = vst [vmem:[%s1711_s30 + $0x48] sm:$0x7f] %v961_v10 }
  0xcf   : > { %976 = vst [vmem:[%s1711_s30 + $0x50] sm:$0x7f] %v962_v62  ;;  %977 = vst [vmem:[%s1711_s30 + $0x58] sm:$0x7f] %v963_v5 }
  0xd0   : > { %978 = vst [vmem:[%s1711_s30 + $0x60] sm:$0x7f] %v964_v23  ;;  %979 = vst [vmem:[%s1711_s30 + $0x68] sm:$0x7f] %v965_v8 }
  0xd1   : > { %v1043_v11 = vld [vmem:[%s1711_s30] sm:$0xff]  ;;  %v1045_v24 = vld [vmem:[%s1711_s30 + $0x8] sm:$0xff] }
  0xd2   : > { %v1047_v4 = vld [vmem:[%s1711_s30 + $0x10] sm:$0xff]  ;;  %v1049_v22 = vld [vmem:[%s1711_s30 + $0x18] sm:$0xff]  ;;  %1044 = vst [vmem:[%s988_s8] sm:$0xff] %v1043_v11  ;;  %1046 = vst [vmem:[%s988_s8 + $0x10] sm:$0xff] %v1045_v24 }
  0xd3   : > { %v1051_v0 = vld [vmem:[%s1711_s30 + $0x20] sm:$0xff]  ;;  %v1053_v43 = vld [vmem:[%s1711_s30 + $0x28] sm:$0xff]  ;;  %1048 = vst [vmem:[%s988_s8 + $0x20] sm:$0xff] %v1047_v4  ;;  %1050 = vst [vmem:[%s988_s8 + $0x30] sm:$0xff] %v1049_v22 }
  0xd4   : > { %1052 = vst [vmem:[%s988_s8 + $0x40] sm:$0xff] %v1051_v0  ;;  %1054 = vst [vmem:[%s988_s8 + $0x50] sm:$0xff] %v1053_v43  ;;  %v1055_v19 = vld [vmem:[%s1711_s30 + $0x30] sm:$0xff]  ;;  %v1057_v2 = vld [vmem:[%s1711_s30 + $0x38] sm:$0xff] }
  0xd5   : > { %v1059_v6 = vld [vmem:[%s1711_s30 + $0x40] sm:$0xff]  ;;  %1056 = vst [vmem:[%s988_s8 + $0x60] sm:$0xff] %v1055_v19  ;;  %1058 = vst [vmem:[%s988_s8 + $0x70] sm:$0xff] %v1057_v2  ;;  %v1061_v3 = vld [vmem:[%s1711_s30 + $0x48] sm:$0xff] }
  0xd6   : > { %1060 = vst [vmem:[%s988_s8 + $0x80] sm:$0xff] %v1059_v6  ;;  %v1063_v42 = vld [vmem:[%s1711_s30 + $0x50] sm:$0xff]  ;;  %v1065_v18 = vld [vmem:[%s1711_s30 + $0x58] sm:$0xff]  ;;  %1062 = vst [vmem:[%s988_s8 + $0x90] sm:$0xff] %v1061_v3 }
  0xd7   : > { %1064 = vst [vmem:[%s988_s8 + $0xa0] sm:$0xff] %v1063_v42  ;;  %1066 = vst [vmem:[%s988_s8 + $0xb0] sm:$0xff] %v1065_v18  ;;  %v1067_v29 = vld [vmem:[%s1711_s30 + $0x60] sm:$0xff]  ;;  %v1069_v25 = vld [vmem:[%s1711_s30 + $0x68] sm:$0xff] }
  0xd8   : > { %1068 = vst [vmem:[%s988_s8 + $0xc0] sm:$0xff] %v1067_v29  ;;  %1070 = vst [vmem:[%s988_s8 + $0xd0] sm:$0xff] %v1069_v25 }
  0xd9 PF: > { %p11_p11 = scmp.ge.s32.totalorder %s1277_s19, 4   ;;  %s1768_s15 = smov %s1226_s16 }
  0xda   : > { %s1769_s16 = smov %s1287_s22  ;;  %s1770_s17 = smov %s1277_s19 }
  0xdb   :  { %13 = sbr.rel (!%p11_p11) target bundleno = 2 (0x2), region = 202 }

</bundles_post_ra>
